<compile_context>
chip_gen: v7x
topology: tpu7x:2x2x1
jax: 0.10.0
libtpu: 0.0.40
codegen_flags: <defaults>
</compile_context>

<pallas_src>
import functools

import jax
import jax.numpy as jnp
from jax.experimental import pallas as pl
from jax.experimental.pallas import tpu as pltpu

IN_DIM = 28 * 28          # 784
H1 = 256
H2 = 128


def encoder_kernel(x_ref, w1_ref, b1_ref, w2_ref, b2_ref, o_ref):
    # x_ref : (bm, 784) f32        w1_ref: (784, 256) bf16   b1_ref: (1, 256) f32
    # w2_ref: (256, 128) bf16      b2_ref: (1, 128)   f32    o_ref : (bm, 128) f32
    x = x_ref[...].astype(jnp.bfloat16)                    # in-kernel cast (VPU, free)
    h = jnp.dot(x, w1_ref[...], preferred_element_type=jnp.float32)
    h = jnp.maximum(h + b1_ref[...], 0.0)                  # Linear1 + ReLU (f32)
    h = h.astype(jnp.bfloat16)                             # single bf16 MXU pass for dot2
    o = jnp.dot(h, w2_ref[...], preferred_element_type=jnp.float32)
    o_ref[...] = jnp.maximum(o + b2_ref[...], 0.0)         # Linear2 + ReLU (f32)


def _round_up(v, m):
    return ((v + m - 1) // m) * m


def _choose_bm(B, bm_max):
    """Batch tile: multiple of 8 (f32 sublanes), capped so the grid has >= 2
    steps whenever B permits (both v7x TensorCores get work), snapped to a
    multiple of 128 (MXU rows) once large enough, never larger than needed."""
    b8 = _round_up(max(B, 8), 8)
    if B <= 16:                        # tiny batch: single small tile
        return b8
    cap = _round_up(pl.cdiv(B, 2), 8)  # guarantees >= 2 grid steps
    bm_eff = min(bm_max, cap, b8)
    if bm_eff >= 256:                  # full MXU rows when affordable
        bm_eff = (bm_eff // 128) * 128
    return max(bm_eff, 8)


def prepare_params(w1, b1, w2, b2):
    """One-time parameter prep (hoisted out of the per-call path).

    w1/w2 are stored (in_features, out_features), i.e. torch weight transposed.
    """
    return (
        w1.astype(jnp.bfloat16),                 # (784, 256)
        b1.reshape(1, H1).astype(jnp.float32),   # (1, 256)
        w2.astype(jnp.bfloat16),                 # (256, 128)
        b2.reshape(1, H2).astype(jnp.float32),   # (1, 128)
    )


@functools.partial(jax.jit, static_argnames=("bm",))
def encoder_forward(x_nchw, w1_bf, b1_2d, w2_bf, b2_2d, *, bm=512):
    """x_nchw: (B, 1, 28, 28) float32 -> (B, 128) float32."""
    B = x_nchw.shape[0]

    # Only a view — x stays f32 and unpadded along K; the kernel casts to bf16.
    x = x_nchw.reshape(B, IN_DIM)

    bm_eff = _choose_bm(B, bm)
    Bp = pl.cdiv(B, bm_eff) * bm_eff
    if Bp != B:
        x = jnp.pad(x, ((0, Bp - B), (0, 0)))    # pad batch rows only

    grid = (Bp // bm_eff,)
    out = pl.pallas_call(
        encoder_kernel,
        out_shape=jax.ShapeDtypeStruct((Bp, H2), jnp.float32),
        grid_spec=pltpu.PrefetchScalarGridSpec(
            num_scalar_prefetch=0,
            grid=grid,
            in_specs=[
                # x tile: last dim 784 == full array dim, rows multiple of 8.
                pl.BlockSpec((bm_eff, IN_DIM), lambda i: (i, 0)),   # streamed
                pl.BlockSpec((IN_DIM, H1), lambda i: (0, 0)),       # w1 (resident)
                pl.BlockSpec((1, H1), lambda i: (0, 0)),            # b1 (resident)
                pl.BlockSpec((H1, H2), lambda i: (0, 0)),           # w2 (resident)
                pl.BlockSpec((1, H2), lambda i: (0, 0)),            # b2 (resident)
            ],
            out_specs=pl.BlockSpec((bm_eff, H2), lambda i: (i, 0)),  # lane-dense 128
        ),
        compiler_params=pltpu.CompilerParams(
            dimension_semantics=("parallel",),   # batch axis shards across TCs (v7x)
        ),
    )(x, w1_bf, b1_2d, w2_bf, b2_2d)

    return out[:B]


def init_params(key):
    """Deterministic init mirroring nn.Linear's uniform(-1/sqrt(fan_in), +)."""
    k1, k2, k3, k4 = jax.random.split(key, 4)
    s1 = 1.0 / jnp.sqrt(IN_DIM)
    s2 = 1.0 / jnp.sqrt(H1)
    # stored as (in_features, out_features) == torch weight transposed
    w1 = jax.random.uniform(k1, (IN_DIM, H1), jnp.float32, -s1, s1)
    b1 = jax.random.uniform(k2, (H1,), jnp.float32, -s1, s1)
    w2 = jax.random.uniform(k3, (H1, H2), jnp.float32, -s2, s2)
    b2 = jax.random.uniform(k4, (H2,), jnp.float32, -s2, s2)
    return w1, b1, w2, b2


def encoder_ref(x_nchw, w1, b1, w2, b2):
    """Pure-JAX f32 reference (matches the PyTorch forward)."""
    x = x_nchw.reshape(x_nchw.shape[0], -1)
    h = jnp.maximum(x @ w1 + b1, 0.0)
    return jnp.maximum(h @ w2 + b2, 0.0)


if __name__ == "__main__":
    key = jax.random.PRNGKey(0)
    kx, kp = jax.random.split(key)

    # Small, non-tile-aligned batch: exercises the batch-padding path and the
    # ">= 2 grid steps" tile choice (bm_eff=32, grid=(2,)) so both v7x TCs work.
    B = 50
    x = jax.random.normal(kx, (B, 1, 28, 28), jnp.float32)   # NCHW like torch
    w1, b1, w2, b2 = init_params(kp)

    params = prepare_params(w1, b1, w2, b2)   # one-time cast, reused every call
    out = encoder_forward(x, *params)
    out = jax.block_until_ready(out)

    ref = encoder_ref(x, w1, b1, w2, b2)
    assert out.shape == (B, H2)
    # bf16 weights + in-kernel bf16 cast of x -> loosened tolerance vs f32 ref
    assert jnp.allclose(out, ref, atol=5e-2, rtol=5e-2), "mismatch vs reference"

    print("KERNEL_OK")
</pallas_src>

<mosaic_0001>
module attributes {stable_mosaic.version = 11 : i64} {
  func.func @encoder_kernel(%arg0: i32, %arg1: memref<32x784xf32, #tpu.memory_space<vmem>>, %arg2: memref<784x256xbf16, #tpu.memory_space<vmem>>, %arg3: memref<1x256xf32, #tpu.memory_space<vmem>>, %arg4: memref<256x128xbf16, #tpu.memory_space<vmem>>, %arg5: memref<1x128xf32, #tpu.memory_space<vmem>>, %arg6: memref<32x128xf32, #tpu.memory_space<vmem>>) attributes {dimension_semantics = [#tpu.dimension_semantics<parallel>], iteration_bounds = array<i64: 2>, scalar_prefetch = 0 : i64, scratch_operands = 0 : i64, tpu.core_type = #tpu.core_type<tc>, window_params = [{transform_indices = @transform_0, window_bounds = array<i64: 32, 784>}, {pipeline_mode = #tpu.pipeline_mode<synchronous>, transform_indices = @transform_1, window_bounds = array<i64: 784, 256>}, {pipeline_mode = #tpu.pipeline_mode<synchronous>, transform_indices = @transform_2, window_bounds = array<i64: 1, 256>}, {pipeline_mode = #tpu.pipeline_mode<synchronous>, transform_indices = @transform_3, window_bounds = array<i64: 256, 128>}, {pipeline_mode = #tpu.pipeline_mode<synchronous>, transform_indices = @transform_4, window_bounds = array<i64: 1, 128>}, {transform_indices = @transform_5, window_bounds = array<i64: 32, 128>}]} {
    %c0 = arith.constant 0 : index
    %c0_0 = arith.constant 0 : index
    %0 = vector.load %arg1[%c0, %c0_0] : memref<32x784xf32, #tpu.memory_space<vmem>>, vector<32x784xf32>
    %1 = arith.truncf %0 : vector<32x784xf32> to vector<32x784xbf16>
    %c0_1 = arith.constant 0 : index
    %c0_2 = arith.constant 0 : index
    %2 = vector.load %arg2[%c0_1, %c0_2] : memref<784x256xbf16, #tpu.memory_space<vmem>>, vector<784x256xbf16>
    %cst = arith.constant dense<0.000000e+00> : vector<32x256xf32>
    %3 = tpu.matmul %1, %2, %cst {dimension_numbers = #tpu.dot_dimension_numbers<[1], [0], [0], [1], [0, 0, 1, 1], [], []>} : vector<32x784xbf16>, vector<784x256xbf16>, vector<32x256xf32> -> vector<32x256xf32>
    %c0_3 = arith.constant 0 : index
    %c0_4 = arith.constant 0 : index
    %4 = vector.load %arg3[%c0_3, %c0_4] : memref<1x256xf32, #tpu.memory_space<vmem>>, vector<1x256xf32>
    %5 = vector.broadcast %4 : vector<1x256xf32> to vector<32x256xf32>
    %6 = arith.addf %3, %5 : vector<32x256xf32>
    %cst_5 = arith.constant 0.000000e+00 : f32
    %7 = vector.broadcast %cst_5 : f32 to vector<32x256xf32>
    %8 = arith.maximumf %6, %7 : vector<32x256xf32>
    %9 = arith.truncf %8 : vector<32x256xf32> to vector<32x256xbf16>
    %c0_6 = arith.constant 0 : index
    %c0_7 = arith.constant 0 : index
    %10 = vector.load %arg4[%c0_6, %c0_7] : memref<256x128xbf16, #tpu.memory_space<vmem>>, vector<256x128xbf16>
    %cst_8 = arith.constant dense<0.000000e+00> : vector<32x128xf32>
    %11 = tpu.matmul %9, %10, %cst_8 {dimension_numbers = #tpu.dot_dimension_numbers<[1], [0], [0], [1], [0, 0, 1, 1], [], []>} : vector<32x256xbf16>, vector<256x128xbf16>, vector<32x128xf32> -> vector<32x128xf32>
    %c0_9 = arith.constant 0 : index
    %c0_10 = arith.constant 0 : index
    %12 = vector.load %arg5[%c0_9, %c0_10] : memref<1x128xf32, #tpu.memory_space<vmem>>, vector<1x128xf32>
    %13 = vector.broadcast %12 : vector<1x128xf32> to vector<32x128xf32>
    %14 = arith.addf %11, %13 : vector<32x128xf32>
    %cst_11 = arith.constant 0.000000e+00 : f32
    %15 = vector.broadcast %cst_11 : f32 to vector<32x128xf32>
    %16 = arith.maximumf %14, %15 : vector<32x128xf32>
    %c0_12 = arith.constant 0 : index
    %c0_13 = arith.constant 0 : index
    %17 = vector.load %arg6[%c0_12, %c0_13] : memref<32x128xf32, #tpu.memory_space<vmem>>, vector<32x128xf32>
    tpu.vector_store %arg6[%c0_12, %c0_13], %16 {strides = array<i32>} : memref<32x128xf32, #tpu.memory_space<vmem>>, vector<32x128xf32>,
    return
  }
  func.func @transform_0(%arg0: i32) -> (i32, i32) {
    %c0_i32 = arith.constant 0 : i32
    %c0_i32_0 = arith.constant 0 : i32
    return %arg0, %c0_i32 : i32, i32
  }
  func.func @transform_1(%arg0: i32) -> (i32, i32) {
    %c0_i32 = arith.constant 0 : i32
    %c0_i32_0 = arith.constant 0 : i32
    %c0_i32_1 = arith.constant 0 : i32
    return %c0_i32, %c0_i32_0 : i32, i32
  }
  func.func @transform_2(%arg0: i32) -> (i32, i32) {
    %c0_i32 = arith.constant 0 : i32
    %c0_i32_0 = arith.constant 0 : i32
    %c0_i32_1 = arith.constant 0 : i32
    return %c0_i32, %c0_i32_0 : i32, i32
  }
  func.func @transform_3(%arg0: i32) -> (i32, i32) {
    %c0_i32 = arith.constant 0 : i32
    %c0_i32_0 = arith.constant 0 : i32
    %c0_i32_1 = arith.constant 0 : i32
    return %c0_i32, %c0_i32_0 : i32, i32
  }
  func.func @transform_4(%arg0: i32) -> (i32, i32) {
    %c0_i32 = arith.constant 0 : i32
    %c0_i32_0 = arith.constant 0 : i32
    %c0_i32_1 = arith.constant 0 : i32
    return %c0_i32, %c0_i32_0 : i32, i32
  }
  func.func @transform_5(%arg0: i32) -> (i32, i32) {
    %c0_i32 = arith.constant 0 : i32
    %c0_i32_0 = arith.constant 0 : i32
    return %arg0, %c0_i32 : i32, i32
  }
}

</mosaic_0001>

<bundles_post_ra>
// kernel: encoder_forward.1
= control target key start
LH: loop header
LB: loop body
LE: loop exit
PB: predicated region body
PF: predicated region fallthrough
CT: control target
= control target key end

     0   :  { %s1753_s18 = smov 0   ;;  %s2154_s0 = inlined_call_operand.vmem [shape: f32[64,784], index: 0, kind: input, shape index: {}]   ;;  %s2155_s1 = inlined_call_operand.vmem [shape: bf16[784,256], index: 1, kind: input, shape index: {}]   ;;  %s2156_s2 = inlined_call_operand.vmem [shape: f32[1,256], index: 2, kind: input, shape index: {}]   ;;  %s2157_s3 = inlined_call_operand.vmem [shape: bf16[256,128], index: 3, kind: input, shape index: {}]   ;;  %s2158_s4 = inlined_call_operand.vmem [shape: f32[1,128], index: 4, kind: input, shape index: {}]   ;;  %s2159_s5 = inlined_call_operand.vmem [shape: f32[64,128], index: 5, kind: output, shape index: {}]  }
   0x1 LB: > { %s1353_s19 = sadd.s32 4294967295, %s1720_s18   ;;  %p1357_p0 = scmp.ge.s32.totalorder %s1720_s18, 1  ;;  %s1720_s18 = sphi %s1753_s18, %s15_s18  }
   0x2   : > { %p189_p1 = scmp.lt.s32.totalorder %s1720_s18, 3 }
   0x4   : > { %p190_p2 = pnand %p1357_p0, %p189_p1 }
   0x5   : > { %v1551_v0 = vld [vmem:[%s2155_s1 + $0x104] ss:$8 sps:$4 sm:$0xff] (!%p190_p2)   ;;  %v1553_v1 = vld [vmem:[%s2155_s1 + $0x100] ss:$8 sps:$4 sm:$0xff] (!%p190_p2)   ;;  %v1554_v2 = vld [vmem:[%s2155_s1 + $0x114] ss:$8 sps:$4 sm:$0xff] (!%p190_p2)  }
   0x6   : > { %193 = sbr.rel (%p190_p2) target bundleno = 588 (0x24c), region = 40  ;;  %934 = vmatprep.subr.bf16.mxu0 (!%p190_p2), %v1551_v0  ;;  %v1556_v3 = vld [vmem:[%s2155_s1 + $0x110] ss:$8 sps:$4 sm:$0xff] (!%p190_p2)   ;;  %v1557_v4 = vld [vmem:[%s2155_s1 + $0x124] ss:$8 sps:$4 sm:$0xff] (!%p190_p2)   ;;  %s1358_s9 = sshll.u32 (!%p190_p2), %s1353_s19, 2 }
   0x7   : > { %935 = vmatpush1.bf16.msra.mxu0 (!%p190_p2), %v1553_v1  ;;  %v1559_v5 = vld [vmem:[%s2155_s1 + $0x120] ss:$8 sps:$4 sm:$0xff] (!%p190_p2)   ;;  %v1560_v6 = vld [vmem:[%s2155_s1 + $0x134] ss:$8 sps:$4 sm:$0xff] (!%p190_p2)   ;;  %v1562_v7 = vld [vmem:[%s2155_s1 + $0x130] ss:$8 sps:$4 sm:$0xff] (!%p190_p2)  }
   0x8   : > { %936 = vmatprep.subr.bf16.mxu0 (!%p190_p2), %v1554_v2  ;;  %v1563_v8 = vld [vmem:[%s2155_s1 + $0x144] ss:$8 sps:$4 sm:$0xff] (!%p190_p2)   ;;  %p219_p3 = scmp.lt.s32.totalorder (!%p190_p2), %s1358_s9, 7  ;;  %v1565_v9 = vld [vmem:[%s2155_s1 + $0x140] ss:$8 sps:$4 sm:$0xff] (!%p190_p2)   ;;  %vm874_vm0 = vcmask (!%p190_p2), 130048  }
   0x9   : > { %v1566_v10 = vld [vmem:[%s2155_s1 + $0x154] ss:$8 sps:$4 sm:$0xff] (!%p190_p2)   ;;  %v1587_v11 = vld [vmem:[%s2155_s1 + $0x4] ss:$8 sps:$4 sm:$0xff] (!%p190_p2)   ;;  %v1589_v12 = vld [vmem:[%s2155_s1] ss:$8 sps:$4 sm:$0xff] (!%p190_p2)  }
   0xa   : > { %v1568_v13 = vld [vmem:[%s2155_s1 + $0x150] ss:$8 sps:$4 sm:$0xff] (!%p190_p2)   ;;  %881 = vmatprep.subr.bf16.mxu1 (!%p190_p2), %v1587_v11  ;;  %v1593_v14 = vld [vmem:[%s2155_s1 + $0x14] ss:$8 sps:$4 sm:$0xff] (!%p190_p2)   ;;  %v1569_v16 = vld [vmem:[%s2155_s1 + $0x164] ss:$8 sps:$4 sm:$0xff] (!%p190_p2)  }
   0xb   : > { %937 = vmatpush1.bf16.msra.mxu0 (!%p190_p2), %v1556_v3  ;;  %882 = vmatpush1.bf16.msra.mxu1 (!%p190_p2), %v1589_v12  ;;  %v1595_v15 = vld [vmem:[%s2155_s1 + $0x10] ss:$8 sps:$4 sm:$0xff] (!%p190_p2)   ;;  %v1571_v17 = vld [vmem:[%s2155_s1 + $0x160] ss:$8 sps:$4 sm:$0xff] (!%p190_p2)   ;;  %v1599_v18 = vld [vmem:[%s2155_s1 + $0x24] ss:$8 sps:$4 sm:$0xff] (!%p190_p2)  }
   0xc   : > { %938 = vmatprep.subr.bf16.mxu0 (!%p190_p2), %v1557_v4  ;;  %883 = vmatprep.subr.bf16.mxu1 (!%p190_p2), %v1593_v14  ;;  %v1572_v19 = vld [vmem:[%s2155_s1 + $0x174] ss:$8 sps:$4 sm:$0xff] (!%p190_p2)   ;;  %v1601_v20 = vld [vmem:[%s2155_s1 + $0x20] ss:$8 sps:$4 sm:$0xff] (!%p190_p2)   ;;  %v1574_v22 = vld [vmem:[%s2155_s1 + $0x170] ss:$8 sps:$4 sm:$0xff] (!%p190_p2)  }
   0xd   : > { %s2161_s9 = smov (!%p219_p3, %s1358_s9), 7  ;;  %v1605_v21 = vld [vmem:[%s2155_s1 + $0x34] ss:$8 sps:$4 sm:$0xff]   ;;  %v1575_v23 = vld [vmem:[%s2155_s1 + $0x184] ss:$8 sps:$4 sm:$0xff]  }
   0xe   : > { %s1541_s6 = smul.u32 56, %s2161_s9  ;;  %v1607_v24 = vld [vmem:[%s2155_s1 + $0x30] ss:$8 sps:$4 sm:$0xff]   ;;  %v1611_v25 = vld [vmem:[%s2155_s1 + $0x44] ss:$8 sps:$4 sm:$0xff]   ;;  %s1361_s7 = sshll.u32 %s2161_s9, 3 }
   0xf   : > { %939 = vmatpush1.bf16.msra.mxu0 %v1559_v5  ;;  %884 = vmatpush1.bf16.msra.mxu1 %v1595_v15  ;;  %v1577_v29 = vld [vmem:[%s2155_s1 + $0x180] ss:$8 sps:$4 sm:$0xff]   ;;  %v1578_v30 = vld [vmem:[%s2155_s1 + $0x194] ss:$8 sps:$4 sm:$0xff]   ;;  %v1580_v33 = vld [vmem:[%s2155_s1 + $0x190] ss:$8 sps:$4 sm:$0xff]   ;;  %s229_s11 = scalar_lea.vmem %s2159_s5, %s1361_s7 }
  0x10   : > { %940 = vmatprep.subr.bf16.mxu0 %v1560_v6  ;;  %885 = vmatprep.subr.bf16.mxu1 %v1599_v18  ;;  %s1833_s21 = scalar_lea.vmem %s2154_s0, %s1541_s6  ;;  %v1613_v31 = vld [vmem:[%s2155_s1 + $0x40] ss:$8 sps:$4 sm:$0xff]   ;;  %v1617_v32 = vld [vmem:[%s2155_s1 + $0x54] ss:$8 sps:$4 sm:$0xff]   ;;  %v1581_v34 = vld [vmem:[%s2155_s1 + $0x1a4] ss:$8 sps:$4 sm:$0xff]  }
  0x11   : > { %v235_v26 = vld [vmem:[%s1833_s21 + $0x18] sm:$0xff]  ;;  %v242_v27 = vld [vmem:[%s1833_s21 + $0x50] sm:$0xff]  ;;  %v1623_v36 = vld [vmem:[%s2155_s1 + $0x64] ss:$8 sps:$4 sm:$0xff]  }
  0x12   : > { %v263_v28 = vpack.c.bf16 %v242_v27, %v235_v26  ;;  %v1619_v35 = vld [vmem:[%s2155_s1 + $0x50] ss:$8 sps:$4 sm:$0xff]   ;;  %v1583_v37 = vld [vmem:[%s2155_s1 + $0x1a0] ss:$8 sps:$4 sm:$0xff]   ;;  %v1584_v38 = vld [vmem:[%s2155_s1 + $0x1b4] ss:$8 sps:$4 sm:$0xff]  }
  0x13   : > { %941 = vmatpush1.bf16.msra.mxu0 %v1562_v7  ;;  %886 = vmatpush1.bf16.msra.mxu1 %v1601_v20  ;;  %v1625_v39 = vld [vmem:[%s2155_s1 + $0x60] ss:$8 sps:$4 sm:$0xff]   ;;  %v1629_v40 = vld [vmem:[%s2155_s1 + $0x74] ss:$8 sps:$4 sm:$0xff]   ;;  %v1586_v41 = vld [vmem:[%s2155_s1 + $0x1b0] ss:$8 sps:$4 sm:$0xff]  }
  0x14   : > { %942 = vmatprep.subr.bf16.mxu0 %v1563_v8  ;;  %887 = vmatprep.subr.bf16.mxu1 %v1605_v21  ;;  %v1590_v42 = vld [vmem:[%s2155_s1 + $0x1c4] ss:$8 sps:$4 sm:$0xff]   ;;  %v1631_v43 = vld [vmem:[%s2155_s1 + $0x70] ss:$8 sps:$4 sm:$0xff]   ;;  %v1592_v45 = vld [vmem:[%s2155_s1 + $0x1c0] ss:$8 sps:$4 sm:$0xff]  }
  0x15   : > { %966 = vmatprep.mubr.bf16.mxu0 %v263_v28  ;;  %v1635_v44 = vld [vmem:[%s2155_s1 + $0x84] ss:$8 sps:$4 sm:$0xff]   ;;  %v1596_v46 = vld [vmem:[%s2155_s1 + $0x1d4] ss:$8 sps:$4 sm:$0xff]   ;;  %v1637_v47 = vld [vmem:[%s2155_s1 + $0x80] ss:$8 sps:$4 sm:$0xff]  }
  0x16   : > { %v1641_v48 = vld [vmem:[%s2155_s1 + $0x94] ss:$8 sps:$4 sm:$0xff]   ;;  %v1598_v49 = vld [vmem:[%s2155_s1 + $0x1d0] ss:$8 sps:$4 sm:$0xff]   ;;  %v1602_v50 = vld [vmem:[%s2155_s1 + $0x1e4] ss:$8 sps:$4 sm:$0xff]  }
  0x17   : > { %943 = vmatpush1.bf16.msra.mxu0 %v1565_v9  ;;  %888 = vmatpush1.bf16.msra.mxu1 %v1607_v24  ;;  %v1643_v51 = vld [vmem:[%s2155_s1 + $0x90] ss:$8 sps:$4 sm:$0xff]   ;;  %v1647_v52 = vld [vmem:[%s2155_s1 + $0xa4] ss:$8 sps:$4 sm:$0xff]   ;;  %v1604_v53 = vld [vmem:[%s2155_s1 + $0x1e0] ss:$8 sps:$4 sm:$0xff]  }
  0x18   : > { %944 = vmatprep.subr.bf16.mxu0 %v1566_v10  ;;  %889 = vmatprep.subr.bf16.mxu1 %v1611_v25  ;;  %v1608_v54 = vld [vmem:[%s2155_s1 + $0x1f4] ss:$8 sps:$4 sm:$0xff]   ;;  %v1649_v55 = vld [vmem:[%s2155_s1 + $0xa0] ss:$8 sps:$4 sm:$0xff]   ;;  %v1610_v57 = vld [vmem:[%s2155_s1 + $0x1f0] ss:$8 sps:$4 sm:$0xff]  }
  0x19   : > { %v1653_v56 = vld [vmem:[%s2155_s1 + $0xb4] ss:$8 sps:$4 sm:$0xff]   ;;  %v1616_v58 = vld [vmem:[%s2155_s1 + $0x204] ss:$8 sps:$4 sm:$0xff]   ;;  %v1655_v61 = vld [vmem:[%s2155_s1 + $0xb0] ss:$8 sps:$4 sm:$0xff]  }
  0x1a   : > { %v234_v59 = vld [vmem:[%s1833_s21 + $0x10] sm:$0xff]  ;;  %v241_v60 = vld [vmem:[%s1833_s21 + $0x48] sm:$0xff]  ;;  %v240_v0 = vld [vmem:[%s1833_s21 + $0x40] sm:$0xff] }
  0x1b   : > { %945 = vmatpush1.bf16.msra.mxu0 %v1568_v13  ;;  %890 = vmatpush1.bf16.msra.mxu1 %v1613_v31  ;;  %v1659_v62 = vld [vmem:[%s2155_s1 + $0xc4] ss:$8 sps:$4 sm:$0xff]   ;;  %v1614_v2 = vld [vmem:[%s2155_s1 + $0x200] ss:$8 sps:$4 sm:$0xff]   ;;  %v262_v3 = vpack.c.bf16 %v241_v60, %v234_v59  ;;  %v1622_v4 = vld [vmem:[%s2155_s1 + $0x214] ss:$8 sps:$4 sm:$0xff]  }
  0x1c   : > { %946 = vmatprep.subr.bf16.mxu0 %v1569_v16  ;;  %891 = vmatprep.subr.bf16.mxu1 %v1617_v32  ;;  %v233_v63 = vld [vmem:[%s1833_s21 + $0x8] sm:$0xff]  ;;  %v1665_v6 = vld [vmem:[%s2155_s1 + $0xd4] ss:$8 sps:$4 sm:$0xff]   ;;  %v1620_v7 = vld [vmem:[%s2155_s1 + $0x210] ss:$8 sps:$4 sm:$0xff]  }
  0x1d   : > { %v261_v1 = vpack.c.bf16 %v240_v0, %v233_v63  ;;  %v1661_v5 = vld [vmem:[%s2155_s1 + $0xc0] ss:$8 sps:$4 sm:$0xff]   ;;  %v1628_v8 = vld [vmem:[%s2155_s1 + $0x224] ss:$8 sps:$4 sm:$0xff]   ;;  %v1667_v9 = vld [vmem:[%s2155_s1 + $0xd0] ss:$8 sps:$4 sm:$0xff]  }
  0x1e   : > { %v249_v10 = vld [vmem:[%s1833_s21 + $0x88] sm:$0xff]  ;;  %v256_v11 = vld [vmem:[%s1833_s21 + $0xc0] sm:$0xff]  ;;  %v255_v13 = vld [vmem:[%s1833_s21 + $0xb8] sm:$0xff] }
  0x1f   : > { %947 = vmatpush1.bf16.msra.mxu0 %v1571_v17  ;;  %892 = vmatpush1.bf16.msra.mxu1 %v1619_v35  ;;  %v248_v12 = vld [vmem:[%s1833_s21 + $0x80] sm:$0xff]  ;;  %v270_v15 = vpack.c.bf16 %v256_v11, %v249_v10  ;;  %v237_v17 = vld [vmem:[%s1833_s21 + $0x28] sm:$0xff]  ;;  %v1634_v21 = vld [vmem:[%s2155_s1 + $0x234] ss:$8 sps:$4 sm:$0xff]  }
  0x20   : > { %948 = vmatprep.subr.bf16.mxu0 %v1572_v19  ;;  %893 = vmatprep.subr.bf16.mxu1 %v1623_v36  ;;  %v1671_v14 = vld [vmem:[%s2155_s1 + $0xe4] ss:$8 sps:$4 sm:$0xff]   ;;  %v269_v16 = vpack.c.bf16 %v255_v13, %v248_v12  ;;  %v1626_v18 = vld [vmem:[%s2155_s1 + $0x220] ss:$8 sps:$4 sm:$0xff]   ;;  %v1679_v24 = vld [vmem:[%s2155_s1 + $0xf0] ss:$8 sps:$4 sm:$0xff]  }
  0x21   : > { %913 = vmatprep.mubr.bf16.mxu1 %v261_v1  ;;  %v1673_v19 = vld [vmem:[%s2155_s1 + $0xe0] ss:$8 sps:$4 sm:$0xff]   ;;  %v1640_v26 = vld [vmem:[%s2155_s1 + $0x244] ss:$8 sps:$4 sm:$0xff]   ;;  %v239_v28 = vld [vmem:[%s1833_s21 + $0x38] sm:$0xff] }
  0x22   : > { %v244_v20 = vld [vmem:[%s1833_s21 + $0x60] sm:$0xff]  ;;  %v254_v31 = vld [vmem:[%s1833_s21 + $0xb0] sm:$0xff]  ;;  %v257_v13 = vld [vmem:[%s1833_s21 + $0xc8] sm:$0xff] }
  0x23   : > { %949 = vmatpush1.bf16.msra.mxu0 %v1574_v22  ;;  %894 = vmatpush1.bf16.msra.mxu1 %v1625_v39  ;;  %v1677_v22 = vld [vmem:[%s2155_s1 + $0xf4] ss:$8 sps:$4 sm:$0xff]   ;;  %v265_v25 = vpack.c.bf16 %v244_v20, %v237_v17  ;;  %v232_v27 = vld [vmem:[%s1833_s21] sm:$0xff]  ;;  %v1689_v1 = vld [vmem:[%s2155_s1 + $0x2d0] ss:$8 sps:$4 sm:$0xff]  }
  0x24   : > { %950 = vmatprep.subr.bf16.mxu0 %v1575_v23  ;;  %895 = vmatprep.subr.bf16.mxu1 %v1629_v40  ;;  %v1632_v23 = vld [vmem:[%s2155_s1 + $0x230] ss:$8 sps:$4 sm:$0xff]   ;;  %v1638_v32 = vld [vmem:[%s2155_s1 + $0x240] ss:$8 sps:$4 sm:$0xff]   ;;  %v260_v35 = vpack.c.bf16 %v239_v28, %v232_v27  ;;  %v1682_v60 = vld [vmem:[%s2155_s1 + $0x2b4] ss:$8 sps:$4 sm:$0xff]  }
  0x25   : > { %v1698_v36 = vld [vmem:[%s2157_s3 + $0x40] sm:$0xff]   ;;  %v246_v39 = vld [vmem:[%s1833_s21 + $0x70] sm:$0xff]  ;;  %v253_v40 = vld [vmem:[%s1833_s21 + $0xa8] sm:$0xff] }
  0x26   : > { %v1674_v59 = vld [vmem:[%s2155_s1 + $0x2a0] ss:$8 sps:$4 sm:$0xff]   ;;  %v1691_v0 = vld [vmem:[%s2155_s1 + $0x2d4] ss:$8 sps:$4 sm:$0xff]  }
  0x27   : > { %951 = vmatpush1.bf16.msra.mxu0 %v1577_v29  ;;  %896 = vmatpush1.bf16.msra.mxu1 %v1631_v43  ;;  %v1688_v29 = vld [vmem:[%s2155_s1 + $0x304] ss:$8 sps:$4 sm:$0xff]   ;;  %v1650_v43 = vld [vmem:[%s2155_s1 + $0x260] ss:$8 sps:$4 sm:$0xff]   ;;  %v250_v12 = vld [vmem:[%s1833_s21 + $0x90] sm:$0xff] }
  0x28   : > { %952 = vmatprep.subr.bf16.mxu0 %v1578_v30  ;;  %897 = vmatprep.subr.bf16.mxu1 %v1635_v44  ;;  %v247_v30 = vld [vmem:[%s1833_s21 + $0x78] sm:$0xff]  ;;  %v1683_v63 = vld [vmem:[%s2155_s1 + $0x2c0] ss:$8 sps:$4 sm:$0xff]   ;;  %v1702_v17 = vld [vmem:[%s2157_s3 + $0x50] sm:$0xff]  }
  0x29   : > { %v1658_v44 = vld [vmem:[%s2155_s1 + $0x274] ss:$8 sps:$4 sm:$0xff]  }
  0x2a   : > { %v1705_v20 = vld [vmem:[%s2157_s3 + $0x18] sm:$0xff]  }
  0x2b   : > { %953 = vmatpush1.bf16.msra.mxu0 %v1580_v33  ;;  %898 = vmatpush1.bf16.msra.mxu1 %v1637_v47  ;;  %v1686_v33 = vld [vmem:[%s2155_s1 + $0x300] ss:$8 sps:$4 sm:$0xff]   ;;  %v238_v47 = vld [vmem:[%s1833_s21 + $0x30] sm:$0xff]  ;;  %v1712_v27 = vld [vmem:[%s2157_s3 + $0x78] sm:$0xff]  }
  0x2c   : > { %954 = vmatprep.subr.bf16.mxu0 %v1581_v34  ;;  %899 = vmatprep.subr.bf16.mxu1 %v1641_v48  ;;  %v1646_v34 = vld [vmem:[%s2155_s1 + $0x254] ss:$8 sps:$4 sm:$0xff]   ;;  %v245_v48 = vld [vmem:[%s1833_s21 + $0x68] sm:$0xff] }
  0x2d   : > { %v1713_v28 = vld [vmem:[%s2157_s3 + $0x38] sm:$0xff]  }
  0x2f   : > { %955 = vmatpush1.bf16.msra.mxu0 %v1583_v37  ;;  %900 = vmatpush1.bf16.msra.mxu1 %v1643_v51  ;;  %v268_v37 = vpack.c.bf16 %v254_v31, %v247_v30  ;;  %v1662_v51 = vld [vmem:[%s2155_s1 + $0x280] ss:$8 sps:$4 sm:$0xff]  }
  0x30   : > { %956 = vmatprep.subr.bf16.mxu0 %v1584_v38  ;;  %901 = vmatprep.subr.bf16.mxu1 %v1647_v52  ;;  %v1644_v38 = vld [vmem:[%s2155_s1 + $0x250] ss:$8 sps:$4 sm:$0xff]   ;;  %v1670_v52 = vld [vmem:[%s2155_s1 + $0x294] ss:$8 sps:$4 sm:$0xff]  }
  0x33   : > { %957 = vmatpush1.bf16.msra.mxu0 %v1586_v41  ;;  %902 = vmatpush1.bf16.msra.mxu1 %v1649_v55  ;;  %v1652_v41 = vld [vmem:[%s2155_s1 + $0x264] ss:$8 sps:$4 sm:$0xff]  }
  0x34   : > { %958 = vmatprep.subr.bf16.mxu0 %v1590_v42  ;;  %903 = vmatprep.subr.bf16.mxu1 %v1653_v56  ;;  %v267_v42 = vpack.c.bf16 %v253_v40, %v246_v39  ;;  %v252_v55 = vld [vmem:[%s1833_s21 + $0xa0] sm:$0xff]  ;;  %v259_v56 = vld [vmem:[%s1833_s21 + $0xd8] sm:$0xff] }
  0x37   : > { %959 = vmatpush1.bf16.msra.mxu0 %v1592_v45  ;;  %904 = vmatpush1.bf16.msra.mxu1 %v1655_v61  ;;  %v1656_v45 = vld [vmem:[%s2155_s1 + $0x270] ss:$8 sps:$4 sm:$0xff]  }
  0x38   : > { %960 = vmatprep.subr.bf16.mxu0 %v1596_v46  ;;  %905 = vmatprep.subr.bf16.mxu1 %v1659_v62  ;;  %v1722_v46 = vmov 0   ;;  %v1680_v61 = vld [vmem:[%s2155_s1 + $0x2b0] ss:$8 sps:$4 sm:$0xff]   ;;  %v1685_v62 = vld [vmem:[%s2155_s1 + $0x2c4] ss:$8 sps:$4 sm:$0xff]  }
  0x3b   : > { %961 = vmatpush1.bf16.msra.mxu0 %v1598_v49  ;;  %906 = vmatpush1.bf16.msra.mxu1 %v1661_v5  ;;  %v1664_v49 = vld [vmem:[%s2155_s1 + $0x284] ss:$8 sps:$4 sm:$0xff]   ;;  %v1695_v5 = vld [vmem:[%s2155_s1 + $0x2f0] ss:$8 sps:$4 sm:$0xff]  }
  0x3c   : > { %962 = vmatprep.subr.bf16.mxu0 %v1602_v50  ;;  %907 = vmatprep.subr.bf16.mxu1 %v1665_v6  ;;  %v266_v50 = vpack.c.bf16 %v245_v48, %v238_v47  ;;  %v236_v6 = vld [vmem:[%s1833_s21 + $0x20] sm:$0xff] }
  0x3d   : > { %v372_v48 = vld [vmem:[%s2156_s2] sm:$0x3] }
  0x3f   : > { %963 = vmatpush1.bf16.msra.mxu0 %v1604_v53  ;;  %908 = vmatpush1.bf16.msra.mxu1 %v1667_v9  ;;  %v1699_v53 = vld [vmem:[%s2157_s3] sm:$0xff]   ;;  %v258_v9 = vld [vmem:[%s1833_s21 + $0xd0] sm:$0xff] }
  0x40   : > { %964 = vmatprep.subr.bf16.mxu0 %v1608_v54  ;;  %909 = vmatprep.subr.bf16.mxu1 %v1671_v14  ;;  %v1668_v54 = vld [vmem:[%s2155_s1 + $0x290] ss:$8 sps:$4 sm:$0xff]   ;;  %v271_v14 = vpack.c.bf16 %v257_v13, %v250_v12 }
  0x43   : > { %965 = vmatpush1.bf16.msra.mxu0 %v1610_v57  ;;  %910 = vmatpush1.bf16.msra.mxu1 %v1673_v19  ;;  %v1676_v57 = vld [vmem:[%s2155_s1 + $0x2a4] ss:$8 sps:$4 sm:$0xff]   ;;  %v1704_v19 = vld [vmem:[%s2157_s3 + $0x58] sm:$0xff]  }
  0x44   : > { %987 = vmatprep.subr.bf16.mxu0 %v1616_v58  ;;  %911 = vmatprep.subr.bf16.mxu1 %v1677_v22  ;;  %v273_v58 = vpack.c.bf16 %v259_v56, %v252_v55  ;;  %v1707_v22 = vld [vmem:[%s2157_s3 + $0x20] sm:$0xff]  }
  0x46   : > { %967 = vmatmul.mubr.bf16.vlgmr.msra.gmra.mrb[0].mxu0 %v262_v3  ;;  %v1692_v3 = vld [vmem:[%s2155_s1 + $0x2e0] ss:$8 sps:$4 sm:$0xff]  }
  0x47   : > { %988 = vmatpush1.bf16.msra.mxu0 %v1614_v2  ;;  %976 = vmatprep.mubr.bf16.mxu0 %v270_v15  ;;  %v1694_v2 = vld [vmem:[%s2155_s1 + $0x2e4] ss:$8 sps:$4 sm:$0xff]  }
  0x48   : > { %989 = vmatprep.subr.bf16.mxu0 %v1622_v4  ;;  %912 = vmatpush1.bf16.msra.mxu1 %v1679_v24  ;;  %v1697_v4 = vld [vmem:[%s2155_s1 + $0x2f4] ss:$8 sps:$4 sm:$0xff]   ;;  %v1700_v15 = vld [vmem:[%s2157_s3 + $0x48] sm:$0xff]  }
  0x49   : > { %1040 = vmatprep.subr.bf16.mxu1 %v1688_v29  ;;  %v1709_v24 = vld [vmem:[%s2157_s3 + $0x28] sm:$0xff]  }
  0x4b   : > { %990 = vmatpush1.bf16.msra.mxu0 %v1620_v7  ;;  %914 = vmatmul.mubr.bf16.vlgmr.msra.gmra.mrb[0].mxu1 %v260_v35  ;;  %v243_v7 = vld [vmem:[%s1833_s21 + $0x58] sm:$0xff] }
  0x4c   : > { %991 = vmatprep.subr.bf16.mxu0 %v1628_v8  ;;  %1041 = vmatpush1.bf16.msra.mxu1 %v1686_v33  ;;  %v251_v8 = vld [vmem:[%s1833_s21 + $0x98] sm:$0xff]  ;;  %v264_v10 = vpack.c.bf16 %v243_v7, %v236_v6 }
  0x4d   : > { %923 = vmatprep.mubr.bf16.mxu1 %v268_v37  ;;  %1481 = vmatprep.subr.bf16.mxu1 %v1698_v36  ;;  %v272_v11 = vpack.c.bf16 %v258_v9, %v251_v8 }
  0x4e   : > { %977 = vmatmul.mubr.bf16.gmra.mrb[4].mxu0 %v269_v16  ;;  %v1701_v16 = vld [vmem:[%s2157_s3 + $0x8] sm:$0xff]  }
  0x4f   : > { %992 = vmatpush1.bf16.msra.mxu0 %v1626_v18  ;;  %1019 = vmatprep.mubr.bf16.mxu0 %v265_v25  ;;  %v1703_v18 = vld [vmem:[%s2157_s3 + $0x10] sm:$0xff]  }
  0x50   : > { %993 = vmatprep.subr.bf16.mxu0 %v1634_v21  ;;  %v1706_v21 = vld [vmem:[%s2157_s3 + $0x60] sm:$0xff]   ;;  %v1710_v25 = vld [vmem:[%s2157_s3 + $0x70] sm:$0xff]  }
  0x53   : > { %994 = vmatpush1.bf16.msra.mxu0 %v1632_v23  ;;  %924 = vmatmul.mubr.bf16.gmra.mrb[4].mxu1 %v267_v42  ;;  %v1708_v23 = vld [vmem:[%s2157_s3 + $0x68] sm:$0xff]  }
  0x54   : > { %995 = vmatprep.subr.bf16.mxu0 %v1640_v26  ;;  %1072 = vmatprep.mubr.bf16.mxu1 %v1722_v46  ;;  %v1711_v26 = vld [vmem:[%s2157_s3 + $0x30] sm:$0xff]  }
  0x57   : > { %996 = vmatpush1.bf16.msra.mxu0 %v1638_v32 }
  0x58   : > { %997 = vmatprep.subr.bf16.mxu0 %v1646_v34 }
  0x5b   : > { %998 = vmatpush1.bf16.msra.mxu0 %v1644_v38  ;;  %1460 = vmatmul.mubr.msk.bf16.vlgmr.msra.gmra.mrb[8].mxu1 %vm874_vm0, %v266_v50 }
  0x5c   : > { %999 = vmatprep.subr.bf16.mxu0 %v1652_v41  ;;  %1082 = vmatprep.mubr.bf16.mxu1 %v1722_v46 }
  0x5d   : > { %1482 = vmatpush3.bf16.msra.mxu1 %v1699_v53 }
  0x5e   : > { %1483 = vmatprep.subr.bf16.mxu1 %v1700_v15 }
  0x5f   : > { %1000 = vmatpush1.bf16.msra.mxu0 %v1650_v43 }
  0x60   : > { %1001 = vmatprep.subr.bf16.mxu0 %v1658_v44 }
  0x61   : > { %1484 = vmatpush3.bf16.msra.mxu1 %v1701_v16 }
  0x62   : > { %1485 = vmatprep.subr.bf16.mxu1 %v1702_v17 }
  0x63   : > { %1002 = vmatpush1.bf16.msra.mxu0 %v1656_v45  ;;  %1461 = vmatmul.mubr.msk.bf16.gmra.mrb[12].mxu1 %vm874_vm0, %v273_v58  ;;  %v374_v45 = vlaneseq }
  0x64   : > { %1003 = vmatprep.subr.bf16.mxu0 %v1664_v49 }
  0x65   : > { %1486 = vmatpush3.bf16.msra.mxu1 %v1703_v18  ;;  %v375_v46 = vshrl.u32 %v374_v45, 7 }
  0x66   : > { %1487 = vmatprep.subr.bf16.mxu1 %v1704_v19 }
  0x67   : > { %1004 = vmatpush1.bf16.msra.mxu0 %v1662_v51  ;;  %v376_v47 = vsub.s32 0, %v375_v46  ;;  %v380_v49 = vsub.s32 1, %v375_v46 }
  0x68   : > { %1005 = vmatprep.subr.bf16.mxu0 %v1670_v52 }
  0x69   : > { %1488 = vmatpush3.bf16.msra.mxu1 %v1705_v20  ;;  %v377_v50 = vrot.slane %v372_v48, %v376_v47  ;;  %v381_v51 = vrot.slane %v372_v48, %v380_v49 }
  0x6a   : > { %1489 = vmatprep.subr.bf16.mxu1 %v1706_v21 }
  0x6b   : > { %1006 = vmatpush1.bf16.msra.mxu0 %v1668_v54 }
  0x6c   : > { %1007 = vmatprep.subr.bf16.mxu0 %v1676_v57 }
  0x6d   : > { %1490 = vmatpush3.bf16.msra.mxu1 %v1707_v22 }
  0x6e   : > { %1491 = vmatprep.subr.bf16.mxu1 %v1708_v23 }
  0x6f   : > { %1008 = vmatpush1.bf16.msra.mxu0 %v1674_v59 }
  0x70   : > { %1009 = vmatprep.subr.bf16.mxu0 %v1682_v60 }
  0x71   : > { %1492 = vmatpush3.bf16.msra.mxu1 %v1709_v24 }
  0x72   : > { %1493 = vmatprep.subr.bf16.mxu1 %v1710_v25 }
  0x73   : > { %1010 = vmatpush1.bf16.msra.mxu0 %v1680_v61 }
  0x74   : > { %1011 = vmatprep.subr.bf16.mxu0 %v1685_v62 }
  0x75   : > { %1494 = vmatpush3.bf16.msra.mxu1 %v1711_v26 }
  0x76   : > { %1495 = vmatprep.subr.bf16.mxu1 %v1712_v27 }
  0x77   : > { %1012 = vmatpush1.bf16.msra.mxu0 %v1683_v63 }
  0x78   : > { %1013 = vmatprep.subr.bf16.mxu0 %v1691_v0 }
  0x79   : > { %1496 = vmatpush3.bf16.msra.mxu1 %v1713_v28 }
  0x7b   : > { %1014 = vmatpush1.bf16.msra.mxu0 %v1689_v1 }
  0x7c   : > { %1015 = vmatprep.subr.bf16.mxu0 %v1694_v2 }
  0x7f   : > { %1016 = vmatpush1.bf16.msra.mxu0 %v1692_v3 }
  0x80   : > { %1017 = vmatprep.subr.bf16.mxu0 %v1697_v4 }
  0x83   : > { %1018 = vmatpush1.bf16.msra.mxu0 %v1695_v5 }
  0x86   : > { %1020 = vmatmul.mubr.bf16.vlgmr.msra.gmra.mrb[0].mxu0 %v264_v10 }
  0x87   : > { %1029 = vmatprep.mubr.bf16.mxu0 %v272_v11 }
  0x8e   : > { %1030 = vmatmul.mubr.bf16.gmra.mrb[4].mxu0 %v271_v14 }
 0x11e   : > { %v915_v29 = vpop.f32.mrb[0].mxu1 }
 0x11f   : > { %v917_v30 = vpop.f32.mrb[1].mxu1  ;;  %v916_v52 = vadd.f32 %v915_v29, %v377_v50 }
 0x120   : > { %v919_v31 = vpop.f32.mrb[2].mxu1  ;;  %v918_v53 = vadd.f32 %v917_v30, %v381_v51 }
 0x121   : > { %v921_v32 = vpop.f32.mrb[3].mxu1  ;;  %v920_v55 = vadd.f32 %v919_v31, %v377_v50 }
 0x122   : > { %v922_v58 = vadd.f32 %v921_v32, %v381_v51 }
 0x126   : > { %v925_v33 = vpop.f32.mrb[4].mxu1 }
 0x127   : > { %v927_v34 = vpop.f32.mrb[5].mxu1  ;;  %v926_v4 = vadd.f32 %v925_v33, %v377_v50  ;;  %v1462_v33 = vld [vmem:[%s2158_s4] ss:$0 sm:$0xff] }
 0x128   : > { %v929_v35 = vpop.f32.mrb[6].mxu1  ;;  %v928_v7 = vadd.f32 %v927_v34, %v381_v51 }
 0x129   : > { %v931_v36 = vpop.f32.mrb[7].mxu1  ;;  %v930_v11 = vadd.f32 %v929_v35, %v377_v50 }
 0x12a   : > { %v932_v15 = vadd.f32 %v931_v36, %v381_v51 }
 0x12e   : > { %v1074_v37 = vpop.f32.mrb[8].mxu1 }
 0x12f   : > { %v1076_v38 = vpop.f32.mrb[9].mxu1 }
 0x130   : > { %v1078_v39 = vpop.f32.mrb[10].mxu1 }
 0x131   : > { %v1080_v40 = vpop.f32.mrb[11].mxu1 }
 0x136   : > { %v1084_v41 = vpop.f32.mrb[12].mxu1 }
 0x137   : > { %v1086_v42 = vpop.f32.mrb[13].mxu1 }
 0x138   : > { %v1088_v43 = vpop.f32.mrb[14].mxu1 }
 0x139   : > { %v1090_v44 = vpop.f32.mrb[15].mxu1 }
 0x159   : > { %v1021_v54 = vpop.f32.mrb[0].mxu0 }
 0x15a   : > { %v1510_v56 = vadd.f32 %v1021_v54, %v916_v52  ;;  %v1023_v57 = vpop.f32.mrb[1].mxu0 }
 0x15b   : > { %v1513_v59 = vadd.f32 %v1023_v57, %v918_v53  ;;  %v1025_v60 = vpop.f32.mrb[2].mxu0 }
 0x15c   : > { %v1511_v61 = vadd.f32 %v1510_v56, %v1074_v37  ;;  %v1516_v62 = vadd.f32 %v1025_v60, %v920_v55  ;;  %v1027_v63 = vpop.f32.mrb[3].mxu0 }
 0x15d   : > { %v1514_v0 = vadd.f32 %v1513_v59, %v1076_v38  ;;  %v1519_v1 = vadd.f32 %v1027_v63, %v922_v58 }
 0x15e   : > { %v1517_v2 = vadd.f32 %v1516_v62, %v1078_v39  ;;  %v1093_v5 = vmax.f32 %v1511_v61, 0.0 }
 0x15f   : > { %v1520_v3 = vadd.f32 %v1519_v1, %v1080_v40  ;;  %v1094_v8 = vmax.f32 %v1514_v0, 0.0 }
 0x160   : > { %v1095_v6 = vmax.f32 %v1517_v2, 0.0 }
 0x161   : > { %v1096_v9 = vmax.f32 %v1520_v3, 0.0  ;;  %v1031_v10 = vpop.f32.mrb[4].mxu0 }
 0x162   : > { %v1101_v12 = vpack.c.bf16 %v1095_v6, %v1093_v5  ;;  %v1522_v13 = vadd.f32 %v1031_v10, %v926_v4  ;;  %v1033_v14 = vpop.f32.mrb[5].mxu0 }
 0x163   : > { %v1525_v16 = vadd.f32 %v1033_v14, %v928_v7  ;;  %v1035_v17 = vpop.f32.mrb[6].mxu0  ;;  %v1102_v18 = vpack.c.bf16 %v1096_v9, %v1094_v8 }
 0x164   : > { %v1523_v19 = vadd.f32 %v1522_v13, %v1084_v41  ;;  %v1528_v20 = vadd.f32 %v1035_v17, %v930_v11  ;;  %v1037_v21 = vpop.f32.mrb[7].mxu0 }
 0x165   : > { %v1526_v22 = vadd.f32 %v1525_v16, %v1086_v42  ;;  %v1531_v23 = vadd.f32 %v1037_v21, %v932_v15  ;;  %1272 = vmatprep.mubr.bf16.mxu1 %v1102_v18 }
 0x166   : > { %v1529_v24 = vadd.f32 %v1528_v20, %v1088_v43  ;;  %1273 = vmatmul.mubr.bf16.vlgmr.msra.gmra.mrb[16].mxu1 %v1101_v12  ;;  %v1097_v26 = vmax.f32 %v1523_v19, 0.0 }
 0x167   : > { %v1532_v25 = vadd.f32 %v1531_v23, %v1090_v44  ;;  %v1098_v28 = vmax.f32 %v1526_v22, 0.0 }
 0x168   : > { %v1099_v27 = vmax.f32 %v1529_v24, 0.0 }
 0x169   : > { %v1100_v29 = vmax.f32 %v1532_v25, 0.0 }
 0x16a   : > { %v1103_v30 = vpack.c.bf16 %v1099_v27, %v1097_v26 }
 0x16b   : > { %v1104_v31 = vpack.c.bf16 %v1100_v29, %v1098_v28 }
 0x16d   : > { %1280 = vmatprep.mubr.bf16.mxu1 %v1104_v31 }
 0x16e   : > { %1281 = vmatmul.mubr.bf16.gmra.mrb[20].mxu1 %v1103_v30 }
 0x239   : > { %v1497_v32 = vpop.f32.mrb[16].mxu1 }
 0x23a   : > { %v1498_v34 = vpop.f32.mrb[17].mxu1 }
 0x23b   : > { %v1499_v35 = vadd.f32 %v1498_v34, %v1497_v32  ;;  %v1500_v36 = vpop.f32.mrb[18].mxu1 }
 0x23c   : > { %v1501_v37 = vpop.f32.mrb[19].mxu1 }
 0x23d   : > { %v1275_v38 = vadd.f32 %v1499_v35, %v1462_v33  ;;  %v1502_v39 = vadd.f32 %v1501_v37, %v1500_v36 }
 0x23f   : > { %v1289_v40 = vmax.f32 %v1275_v38, 0.0  ;;  %v1278_v41 = vadd.f32 %v1502_v39, %v1462_v33 }
 0x241   : > { %1293 = vst [vmem:[%s229_s11] sm:$0xff] %v1289_v40  ;;  %v1290_v42 = vmax.f32 %v1278_v41, 0.0  ;;  %v1503_v43 = vpop.f32.mrb[20].mxu1 }
 0x242   : > { %v1504_v44 = vpop.f32.mrb[21].mxu1 }
 0x243   : > { %1294 = vst [vmem:[%s229_s11 + $0x8] sm:$0xff] %v1290_v42  ;;  %v1505_v45 = vadd.f32 %v1504_v44, %v1503_v43  ;;  %v1506_v46 = vpop.f32.mrb[22].mxu1 }
 0x244   : > { %v1507_v47 = vpop.f32.mrb[23].mxu1 }
 0x245   : > { %v1283_v48 = vadd.f32 %v1505_v45, %v1462_v33  ;;  %v1508_v49 = vadd.f32 %v1507_v47, %v1506_v46 }
 0x247   : > { %v1291_v50 = vmax.f32 %v1283_v48, 0.0  ;;  %v1286_v51 = vadd.f32 %v1508_v49, %v1462_v33 }
 0x249   : > { %1295 = vst [vmem:[%s229_s11 + $0x10] sm:$0xff] %v1291_v50  ;;  %v1292_v52 = vmax.f32 %v1286_v51, 0.0 }
 0x24b   : > { %1296 = vst [vmem:[%s229_s11 + $0x18] sm:$0xff] %v1292_v52 }
 0x24c PF: > { %s15_s18 = sadd.s32 1, %s1720_s18  }
 0x24d   : > { %p12_p4 = scmp.ge.s32.totalorder %s15_s18, 4  }
 0x24f   :  { %14 = sbr.rel (!%p12_p4) target bundleno = 1 (0x1), region = 70 }

</bundles_post_ra>
